<compile_context>
chip_gen: v6e
topology: v6e:2x2x1
jax: 0.10.0
libtpu: 0.0.40
codegen_flags: <defaults>
</compile_context>

<pallas_src>
import jax
import jax.numpy as jnp
from jax.experimental import pallas as pl
from jax.experimental.pallas import tpu as pltpu

NEG_INF = -1e30


def _round_up(x, m):
    return ((x + m - 1) // m) * m


def _make_bidaf_kernel(mxu_dtype=None):
    """mxu_dtype=jnp.bfloat16 casts MXU operands (useful on v6e/v7x); None keeps
    every matmul operand in float32 (matches the f32 reference exactly)."""

    def mx(x):
        return x if mxu_dtype is None else x.astype(mxu_dtype)

    def kernel(c_ref, q_ref, cm_ref, qm_ref, cw_ref, qw_ref, cqw_ref, bias_ref,
               out_ref):
        c = c_ref[...]                       # (Bt, Cp, Dp) f32
        q = q_ref[...]                       # (Bt, Qp, Dp) f32
        cm = cm_ref[...]                     # (Bt, Cp, 1)  f32 in {0, 1}
        qm = qm_ref[...]                     # (Bt, 1,  Qp) f32 in {0, 1}
        bias = bias_ref[0]                   # scalar, SMEM

        dp = c.shape[-1]

        cw = cw_ref[...].reshape(1, 1, dp)   # (1, 1, Dp) lane-dense rows
        qw = qw_ref[...].reshape(1, 1, dp)
        cqw = cqw_ref[...].reshape(1, 1, dp)

        # --- similarity: s[b,i,j] = (c_i*cqw).q_j + q_j.qw + c_i.cw + bias ---
        # q_j.qw is independent of i, so it is folded into the matmul lhs and
        # comes out of the same MXU op as s2; c_i.cw is a VPU mul + lane reduce.
        s0 = jnp.sum(c * cw, axis=-1, keepdims=True)                 # (Bt,Cp,1)
        lhs = c * cqw + qw                                           # (Bt,Cp,Dp)
        s = jnp.einsum('bcd,bqd->bcq', mx(lhs), mx(q),
                       preferred_element_type=jnp.float32)           # (Bt,Cp,Qp)
        s = s + s0 + bias

        # --- masked softmax over query positions (dim=2 in torch) ---
        l1 = jnp.where(qm > 0.0, s, NEG_INF)
        m1 = jnp.max(l1, axis=-1, keepdims=True)
        e1 = jnp.exp(l1 - m1)
        p1 = e1 * pl.reciprocal(jnp.sum(e1, axis=-1, keepdims=True),
                                approx=False)                        # (Bt,Cp,Qp)

        # --- masked softmax over context positions (dim=1 in torch) ---
        l2 = jnp.where(cm > 0.0, s, NEG_INF)
        m2 = jnp.max(l2, axis=1, keepdims=True)
        e2 = jnp.exp(l2 - m2)
        p2 = e2 * pl.reciprocal(jnp.sum(e2, axis=1, keepdims=True),
                                approx=False)                        # (Bt,Cp,Qp)

        # --- attention outputs ---
        a = jnp.einsum('bcq,bqd->bcd', mx(p1), mx(q),
                       preferred_element_type=jnp.float32)           # (Bt,Cp,Dp)
        # b = p1 @ (p2^T @ c): reassociated, avoids the (Cp, Cp) intermediate;
        # the transposed-lhs contraction is expressed via the einsum spec.
        kq = jnp.einsum('bcq,bcd->bqd', mx(p2), mx(c),
                        preferred_element_type=jnp.float32)          # (Bt,Qp,Dp)
        b = jnp.einsum('bcq,bqd->bcd', mx(p1), mx(kq),
                       preferred_element_type=jnp.float32)           # (Bt,Cp,Dp)

        # --- lane-dense slice stores (Dp is a multiple of 128): no concat ---
        odt = out_ref.dtype
        out_ref[:, :, 0 * dp:1 * dp] = c.astype(odt)
        out_ref[:, :, 1 * dp:2 * dp] = a.astype(odt)
        out_ref[:, :, 2 * dp:3 * dp] = (c * a).astype(odt)
        out_ref[:, :, 3 * dp:4 * dp] = (c * b).astype(odt)

    return kernel


def bidaf_attention(c, q, c_mask, q_mask, c_weight, q_weight, cq_weight, bias,
                    *, block_b=None, mxu_dtype=None):
    """BiDAF attention forward (eval mode). Returns (B, c_len, 4*D)."""
    B, c_len, D = c.shape
    q_len = q.shape[1]
    f32 = jnp.float32

    # MXU/lane-friendly padded shapes (padding is folded into the masks).
    Dp = _round_up(D, 128)
    Qp = _round_up(q_len, 128)
    Cp = _round_up(c_len, 8)

    # Batch elements per grid step: amortize per-step overhead and enlarge DMAs
    # while staying within a ~32 MiB working-set budget (fits v7x's 64 MiB/TC;
    # v5e/v6e have 128 MiB and simply get extra headroom).
    if block_b is None:
        bytes_per_b = 4 * (2 * (Cp * Dp + Qp * Dp + Cp + Qp + Cp * 4 * Dp)
                           + 4 * Cp * Qp + 3 * Cp * Dp + 2 * Qp * Dp)
        block_b = int(max(1, min(B, (32 * 1024 * 1024) // max(bytes_per_b, 1), 8)))
    Bp = _round_up(B, block_b)

    # Zero-pad everything; padded query/context positions are masked out and
    # padded feature columns contribute exactly zero to every contraction.
    cp_ = jnp.zeros((Bp, Cp, Dp), f32).at[:B, :c_len, :D].set(c.astype(f32))
    qp_ = jnp.zeros((Bp, Qp, Dp), f32).at[:B, :q_len, :D].set(q.astype(f32))
    cm_ = jnp.zeros((Bp, Cp, 1), f32).at[:B, :c_len, 0].set(c_mask.astype(f32))
    qm_ = jnp.zeros((Bp, 1, Qp), f32).at[:B, 0, :q_len].set(q_mask.astype(f32))
    cw_ = jnp.zeros((1, Dp), f32).at[0, :D].set(c_weight.reshape(D).astype(f32))
    qw_ = jnp.zeros((1, Dp), f32).at[0, :D].set(q_weight.reshape(D).astype(f32))
    cqw_ = jnp.zeros((1, Dp), f32).at[0, :D].set(cq_weight.reshape(D).astype(f32))
    bias_ = bias.reshape(1).astype(f32)

    out_p = pl.pallas_call(
        _make_bidaf_kernel(mxu_dtype),
        out_shape=jax.ShapeDtypeStruct((Bp, Cp, 4 * Dp), c.dtype),
        grid=(Bp // block_b,),
        in_specs=[
            pl.BlockSpec((block_b, Cp, Dp), lambda i: (i, 0, 0)),   # c
            pl.BlockSpec((block_b, Qp, Dp), lambda i: (i, 0, 0)),   # q
            pl.BlockSpec((block_b, Cp, 1), lambda i: (i, 0, 0)),    # c_mask
            pl.BlockSpec((block_b, 1, Qp), lambda i: (i, 0, 0)),    # q_mask
            pl.BlockSpec((1, Dp), lambda i: (0, 0)),                # c_weight row
            pl.BlockSpec((1, Dp), lambda i: (0, 0)),                # q_weight row
            pl.BlockSpec((1, Dp), lambda i: (0, 0)),                # cq_weight row
            pl.BlockSpec(memory_space=pltpu.MemorySpace.SMEM),      # bias scalar
        ],
        out_specs=pl.BlockSpec((block_b, Cp, 4 * Dp), lambda i: (i, 0, 0)),
        compiler_params=pltpu.CompilerParams(
            dimension_semantics=("parallel",),
            vmem_limit_bytes=48 * 1024 * 1024,
        ),
    )(cp_, qp_, cm_, qm_, cw_, qw_, cqw_, bias_)

    out_p = out_p[:B, :c_len]
    if Dp == D:
        return out_p
    # Strip the feature padding out of each of the four output slabs.
    return jnp.concatenate([out_p[..., k * Dp:k * Dp + D] for k in range(4)],
                           axis=-1)


def bidaf_reference(c, q, c_mask, q_mask, cw, qw, cqw, bias):
    """Pure-JAX reference mirroring the PyTorch forward (eval mode)."""
    B, c_len, D = c.shape
    q_len = q.shape[1]
    s0 = c @ cw                                          # (B, c_len, 1)
    s1 = jnp.swapaxes(q @ qw, 1, 2)                      # (B, 1, q_len)
    s2 = (c * cqw.reshape(1, 1, D)) @ jnp.swapaxes(q, 1, 2)
    s = s0 + s1 + s2 + bias.reshape(())
    qm = q_mask.astype(jnp.float32).reshape(B, 1, q_len)
    cm = c_mask.astype(jnp.float32).reshape(B, c_len, 1)
    S1 = jax.nn.softmax(qm * s + (1.0 - qm) * NEG_INF, axis=2)
    S2 = jax.nn.softmax(cm * s + (1.0 - cm) * NEG_INF, axis=1)
    a = S1 @ q
    b = (S1 @ jnp.swapaxes(S2, 1, 2)) @ c
    return jnp.concatenate([c, a, c * a, c * b], axis=2)


if __name__ == "__main__":
    B, c_len, q_len, hidden = 2, 16, 8, 32

    key = jax.random.PRNGKey(0)
    kc, kq, kcw, kqw, kcqw = jax.random.split(key, 5)

    c = jax.random.normal(kc, (B, c_len, hidden), dtype=jnp.float32)
    q = jax.random.normal(kq, (B, q_len, hidden), dtype=jnp.float32)

    # Boolean masks (True = keep); ragged but with at least one valid position.
    c_valid = jnp.array([c_len, c_len - 4])
    q_valid = jnp.array([q_len, q_len - 3])
    c_mask = jnp.arange(c_len)[None, :] < c_valid[:, None]
    q_mask = jnp.arange(q_len)[None, :] < q_valid[:, None]

    # Xavier-uniform init matching nn.init.xavier_uniform_ fan rules.
    b_cw = (6.0 / (hidden + 1)) ** 0.5
    c_weight = jax.random.uniform(kcw, (hidden, 1), jnp.float32, -b_cw, b_cw)
    q_weight = jax.random.uniform(kqw, (hidden, 1), jnp.float32, -b_cw, b_cw)
    b_cqw = (6.0 / (2 * hidden)) ** 0.5
    cq_weight = jax.random.uniform(kcqw, (1, 1, hidden), jnp.float32, -b_cqw, b_cqw)
    bias = jnp.zeros((1,), jnp.float32)

    out = bidaf_attention(c, q, c_mask, q_mask,
                          c_weight, q_weight, cq_weight, bias)
    out = jax.block_until_ready(out)

    ref = bidaf_reference(c, q, c_mask, q_mask,
                          c_weight, q_weight, cq_weight, bias)
    assert out.shape == (B, c_len, 4 * hidden)
    # Tolerance allows for MXU bf16-pass rounding of f32 matmuls (TPU default
    # matmul precision) plus the reassociated b-matmul; genuine implementation
    # errors (masking / association / layout) produce O(1) mismatches.  On
    # full-precision f32 paths the observed difference is ~1e-6.
    assert jnp.allclose(out, ref, atol=1e-2, rtol=1e-2), "mismatch vs reference"

    print("KERNEL_OK")
</pallas_src>

<mosaic_0001>
module attributes {stable_mosaic.version = 11 : i64} {
  func.func @kernel(%arg0: i32, %arg1: memref<2x16x128xf32, #tpu.memory_space<vmem>>, %arg2: memref<2x128x128xf32, #tpu.memory_space<vmem>>, %arg3: memref<2x16x1xf32, #tpu.memory_space<vmem>>, %arg4: memref<2x1x128xf32, #tpu.memory_space<vmem>>, %arg5: memref<1x128xf32, #tpu.memory_space<vmem>>, %arg6: memref<1x128xf32, #tpu.memory_space<vmem>>, %arg7: memref<1x128xf32, #tpu.memory_space<vmem>>, %arg8: memref<1xf32, #tpu.memory_space<smem>>, %arg9: memref<2x16x512xf32, #tpu.memory_space<vmem>>) attributes {dimension_semantics = [#tpu.dimension_semantics<parallel>], iteration_bounds = array<i64: 1>, scalar_prefetch = 0 : i64, scratch_operands = 0 : i64, tpu.core_type = #tpu.core_type<tc>, window_params = [{transform_indices = @transform_0, window_bounds = array<i64: 2, 16, 128>}, {transform_indices = @transform_1, window_bounds = array<i64: 2, 128, 128>}, {transform_indices = @transform_2, window_bounds = array<i64: 2, 16, 1>}, {transform_indices = @transform_3, window_bounds = array<i64: 2, 1, 128>}, {pipeline_mode = #tpu.pipeline_mode<synchronous>, transform_indices = @transform_4, window_bounds = array<i64: 1, 128>}, {pipeline_mode = #tpu.pipeline_mode<synchronous>, transform_indices = @transform_5, window_bounds = array<i64: 1, 128>}, {pipeline_mode = #tpu.pipeline_mode<synchronous>, transform_indices = @transform_6, window_bounds = array<i64: 1, 128>}, {transform_indices = @transform_7, window_bounds = array<i64: 1>}, {transform_indices = @transform_8, window_bounds = array<i64: 2, 16, 512>}]} {
    %c0 = arith.constant 0 : index
    %c0_0 = arith.constant 0 : index
    %c0_1 = arith.constant 0 : index
    %0 = vector.load %arg1[%c0, %c0_0, %c0_1] : memref<2x16x128xf32, #tpu.memory_space<vmem>>, vector<2x16x128xf32>
    %c0_2 = arith.constant 0 : index
    %c0_3 = arith.constant 0 : index
    %c0_4 = arith.constant 0 : index
    %1 = vector.load %arg2[%c0_2, %c0_3, %c0_4] : memref<2x128x128xf32, #tpu.memory_space<vmem>>, vector<2x128x128xf32>
    %c0_5 = arith.constant 0 : index
    %c0_6 = arith.constant 0 : index
    %c0_7 = arith.constant 0 : index
    %2 = vector.load %arg3[%c0_5, %c0_6, %c0_7] : memref<2x16x1xf32, #tpu.memory_space<vmem>>, vector<2x16x1xf32>
    %c0_8 = arith.constant 0 : index
    %c0_9 = arith.constant 0 : index
    %c0_10 = arith.constant 0 : index
    %3 = vector.load %arg4[%c0_8, %c0_9, %c0_10] : memref<2x1x128xf32, #tpu.memory_space<vmem>>, vector<2x1x128xf32>
    %c0_11 = arith.constant 0 : index
    %4 = memref.load %arg8[%c0_11] : memref<1xf32, #tpu.memory_space<smem>>
    %c0_12 = arith.constant 0 : index
    %c0_13 = arith.constant 0 : index
    %5 = vector.load %arg5[%c0_12, %c0_13] : memref<1x128xf32, #tpu.memory_space<vmem>>, vector<1x128xf32>
    %6 = vector.shape_cast %5 : vector<1x128xf32> to vector<1x1x128xf32>
    %c0_14 = arith.constant 0 : index
    %c0_15 = arith.constant 0 : index
    %7 = vector.load %arg6[%c0_14, %c0_15] : memref<1x128xf32, #tpu.memory_space<vmem>>, vector<1x128xf32>
    %8 = vector.shape_cast %7 : vector<1x128xf32> to vector<1x1x128xf32>
    %c0_16 = arith.constant 0 : index
    %c0_17 = arith.constant 0 : index
    %9 = vector.load %arg7[%c0_16, %c0_17] : memref<1x128xf32, #tpu.memory_space<vmem>>, vector<1x128xf32>
    %10 = vector.shape_cast %9 : vector<1x128xf32> to vector<1x1x128xf32>
    %11 = vector.broadcast %6 : vector<1x1x128xf32> to vector<2x16x128xf32>
    %12 = arith.mulf %0, %11 : vector<2x16x128xf32>
    %cst = arith.constant dense<0.000000e+00> : vector<2x16xf32>
    %13 = vector.multi_reduction <add>, %12, %cst [2] : vector<2x16x128xf32> to vector<2x16xf32>
    %14 = vector.shape_cast %13 : vector<2x16xf32> to vector<2x16x1xf32>
    %15 = vector.broadcast %10 : vector<1x1x128xf32> to vector<2x16x128xf32>
    %16 = arith.mulf %0, %15 : vector<2x16x128xf32>
    %17 = vector.broadcast %8 : vector<1x1x128xf32> to vector<2x16x128xf32>
    %18 = arith.addf %16, %17 : vector<2x16x128xf32>
    "tpu.trace_start"() <{level = 10 : i32, message = "bcd,bqd->bcq"}> : () -> ()
    %cst_18 = arith.constant dense<0.000000e+00> : vector<2x16x128xf32>
    %19 = tpu.matmul %18, %1, %cst_18 {dimension_numbers = #tpu.dot_dimension_numbers<[2], [2], [1], [1], [0, 0, 0, 1, 1, 1], [0], [0]>} : vector<2x16x128xf32>, vector<2x128x128xf32>, vector<2x16x128xf32> -> vector<2x16x128xf32>
    "tpu.trace_stop"() : () -> ()
    %20 = vector.broadcast %14 : vector<2x16x1xf32> to vector<2x16x128xf32>
    %21 = arith.addf %19, %20 : vector<2x16x128xf32>
    %22 = vector.broadcast %4 : f32 to vector<2x16x128xf32>
    %23 = arith.addf %21, %22 : vector<2x16x128xf32>
    %cst_19 = arith.constant 0.000000e+00 : f32
    %24 = vector.broadcast %cst_19 : f32 to vector<2x1x128xf32>
    %25 = arith.cmpf ogt, %3, %24 : vector<2x1x128xf32>
    %cst_20 = arith.constant -1.000000e+30 : f32
    %26 = vector.shape_cast %25 : vector<2x1x128xi1> to vector<2x1x128xi1>
    %27 = vector.broadcast %26 : vector<2x1x128xi1> to vector<2x16x128xi1>
    %28 = vector.broadcast %cst_20 : f32 to vector<2x16x128xf32>
    %29 = arith.select %27, %23, %28 : vector<2x16x128xi1>, vector<2x16x128xf32>
    %cst_21 = arith.constant dense<0xFF800000> : vector<2x16xf32>
    %30 = vector.multi_reduction <maximumf>, %29, %cst_21 [2] : vector<2x16x128xf32> to vector<2x16xf32>
    %31 = vector.shape_cast %30 : vector<2x16xf32> to vector<2x16x1xf32>
    %32 = vector.broadcast %31 : vector<2x16x1xf32> to vector<2x16x128xf32>
    %33 = arith.subf %29, %32 : vector<2x16x128xf32>
    %34 = math.exp %33 : vector<2x16x128xf32>
    %cst_22 = arith.constant dense<0.000000e+00> : vector<2x16xf32>
    %35 = vector.multi_reduction <add>, %34, %cst_22 [2] : vector<2x16x128xf32> to vector<2x16xf32>
    %36 = vector.shape_cast %35 : vector<2x16xf32> to vector<2x16x1xf32>
    %37 = tpu.reciprocal %36 : vector<2x16x1xf32> -> vector<2x16x1xf32>
    %38 = vector.broadcast %37 : vector<2x16x1xf32> to vector<2x16x128xf32>
    %39 = arith.mulf %34, %38 : vector<2x16x128xf32>
    %cst_23 = arith.constant 0.000000e+00 : f32
    %40 = vector.broadcast %cst_23 : f32 to vector<2x16x1xf32>
    %41 = arith.cmpf ogt, %2, %40 : vector<2x16x1xf32>
    %cst_24 = arith.constant -1.000000e+30 : f32
    %42 = vector.shape_cast %41 : vector<2x16x1xi1> to vector<2x16x1xi1>
    %43 = vector.broadcast %42 : vector<2x16x1xi1> to vector<2x16x128xi1>
    %44 = vector.broadcast %cst_24 : f32 to vector<2x16x128xf32>
    %45 = arith.select %43, %23, %44 : vector<2x16x128xi1>, vector<2x16x128xf32>
    %cst_25 = arith.constant dense<0xFF800000> : vector<2x128xf32>
    %46 = vector.multi_reduction <maximumf>, %45, %cst_25 [1] : vector<2x16x128xf32> to vector<2x128xf32>
    %47 = vector.shape_cast %46 : vector<2x128xf32> to vector<2x1x128xf32>
    %48 = vector.broadcast %47 : vector<2x1x128xf32> to vector<2x16x128xf32>
    %49 = arith.subf %45, %48 : vector<2x16x128xf32>
    %50 = math.exp %49 : vector<2x16x128xf32>
    %cst_26 = arith.constant dense<0.000000e+00> : vector<2x128xf32>
    %51 = vector.multi_reduction <add>, %50, %cst_26 [1] : vector<2x16x128xf32> to vector<2x128xf32>
    %52 = vector.shape_cast %51 : vector<2x128xf32> to vector<2x1x128xf32>
    %53 = tpu.reciprocal %52 : vector<2x1x128xf32> -> vector<2x1x128xf32>
    %54 = vector.broadcast %53 : vector<2x1x128xf32> to vector<2x16x128xf32>
    %55 = arith.mulf %50, %54 : vector<2x16x128xf32>
    "tpu.trace_start"() <{level = 10 : i32, message = "bcq,bqd->bcd"}> : () -> ()
    %cst_27 = arith.constant dense<0.000000e+00> : vector<2x16x128xf32>
    %56 = tpu.matmul %39, %1, %cst_27 {dimension_numbers = #tpu.dot_dimension_numbers<[2], [1], [1], [2], [0, 0, 0, 1, 1, 2], [0], [0]>} : vector<2x16x128xf32>, vector<2x128x128xf32>, vector<2x16x128xf32> -> vector<2x16x128xf32>
    "tpu.trace_stop"() : () -> ()
    "tpu.trace_start"() <{level = 10 : i32, message = "bcq,bcd->bqd"}> : () -> ()
    %cst_28 = arith.constant dense<0.000000e+00> : vector<2x128x128xf32>
    %57 = tpu.matmul %55, %0, %cst_28 {dimension_numbers = #tpu.dot_dimension_numbers<[1], [1], [2], [2], [0, 0, 0, 2, 1, 2], [0], [0]>} : vector<2x16x128xf32>, vector<2x16x128xf32>, vector<2x128x128xf32> -> vector<2x128x128xf32>
    "tpu.trace_stop"() : () -> ()
    "tpu.trace_start"() <{level = 10 : i32, message = "bcq,bqd->bcd"}> : () -> ()
    %cst_29 = arith.constant dense<0.000000e+00> : vector<2x16x128xf32>
    %58 = tpu.matmul %39, %57, %cst_29 {dimension_numbers = #tpu.dot_dimension_numbers<[2], [1], [1], [2], [0, 0, 0, 1, 1, 2], [0], [0]>} : vector<2x16x128xf32>, vector<2x128x128xf32>, vector<2x16x128xf32> -> vector<2x16x128xf32>
    "tpu.trace_stop"() : () -> ()
    %c0_30 = arith.constant 0 : index
    %c0_31 = arith.constant 0 : index
    %c0_32 = arith.constant 0 : index
    %59 = vector.load %arg9[%c0_30, %c0_31, %c0_32] : memref<2x16x512xf32, #tpu.memory_space<vmem>>, vector<2x16x128xf32>
    tpu.vector_store %arg9[%c0_30, %c0_31, %c0_32], %0 {strides = array<i32>} : memref<2x16x512xf32, #tpu.memory_space<vmem>>, vector<2x16x128xf32>,
    %c0_33 = arith.constant 0 : index
    %c0_34 = arith.constant 0 : index
    %c128 = arith.constant 128 : index
    %60 = vector.load %arg9[%c0_33, %c0_34, %c128] : memref<2x16x512xf32, #tpu.memory_space<vmem>>, vector<2x16x128xf32>
    tpu.vector_store %arg9[%c0_33, %c0_34, %c128], %56 {strides = array<i32>} : memref<2x16x512xf32, #tpu.memory_space<vmem>>, vector<2x16x128xf32>,
    %61 = arith.mulf %0, %56 : vector<2x16x128xf32>
    %c0_35 = arith.constant 0 : index
    %c0_36 = arith.constant 0 : index
    %c256 = arith.constant 256 : index
    %62 = vector.load %arg9[%c0_35, %c0_36, %c256] : memref<2x16x512xf32, #tpu.memory_space<vmem>>, vector<2x16x128xf32>
    tpu.vector_store %arg9[%c0_35, %c0_36, %c256], %61 {strides = array<i32>} : memref<2x16x512xf32, #tpu.memory_space<vmem>>, vector<2x16x128xf32>,
    %63 = arith.mulf %0, %58 : vector<2x16x128xf32>
    %c0_37 = arith.constant 0 : index
    %c0_38 = arith.constant 0 : index
    %c384 = arith.constant 384 : index
    %64 = vector.load %arg9[%c0_37, %c0_38, %c384] : memref<2x16x512xf32, #tpu.memory_space<vmem>>, vector<2x16x128xf32>
    tpu.vector_store %arg9[%c0_37, %c0_38, %c384], %63 {strides = array<i32>} : memref<2x16x512xf32, #tpu.memory_space<vmem>>, vector<2x16x128xf32>,
    return
  }
  func.func @transform_0(%arg0: i32) -> (i32, i32, i32) {
    %c0_i32 = arith.constant 0 : i32
    %c0_i32_0 = arith.constant 0 : i32
    %c0_i32_1 = arith.constant 0 : i32
    return %arg0, %c0_i32, %c0_i32_0 : i32, i32, i32
  }
  func.func @transform_1(%arg0: i32) -> (i32, i32, i32) {
    %c0_i32 = arith.constant 0 : i32
    %c0_i32_0 = arith.constant 0 : i32
    %c0_i32_1 = arith.constant 0 : i32
    return %arg0, %c0_i32, %c0_i32_0 : i32, i32, i32
  }
  func.func @transform_2(%arg0: i32) -> (i32, i32, i32) {
    %c0_i32 = arith.constant 0 : i32
    %c0_i32_0 = arith.constant 0 : i32
    %c0_i32_1 = arith.constant 0 : i32
    return %arg0, %c0_i32, %c0_i32_0 : i32, i32, i32
  }
  func.func @transform_3(%arg0: i32) -> (i32, i32, i32) {
    %c0_i32 = arith.constant 0 : i32
    %c0_i32_0 = arith.constant 0 : i32
    %c0_i32_1 = arith.constant 0 : i32
    return %arg0, %c0_i32, %c0_i32_0 : i32, i32, i32
  }
  func.func @transform_4(%arg0: i32) -> (i32, i32) {
    %c0_i32 = arith.constant 0 : i32
    %c0_i32_0 = arith.constant 0 : i32
    %c0_i32_1 = arith.constant 0 : i32
    return %c0_i32, %c0_i32_0 : i32, i32
  }
  func.func @transform_5(%arg0: i32) -> (i32, i32) {
    %c0_i32 = arith.constant 0 : i32
    %c0_i32_0 = arith.constant 0 : i32
    %c0_i32_1 = arith.constant 0 : i32
    return %c0_i32, %c0_i32_0 : i32, i32
  }
  func.func @transform_6(%arg0: i32) -> (i32, i32) {
    %c0_i32 = arith.constant 0 : i32
    %c0_i32_0 = arith.constant 0 : i32
    %c0_i32_1 = arith.constant 0 : i32
    return %c0_i32, %c0_i32_0 : i32, i32
  }
  func.func @transform_7(%arg0: i32) -> i32 {
    %c0_i32 = arith.constant 0 : i32
    %c0_i32_0 = arith.constant 0 : i32
    return %c0_i32 : i32
  }
  func.func @transform_8(%arg0: i32) -> (i32, i32, i32) {
    %c0_i32 = arith.constant 0 : i32
    %c0_i32_0 = arith.constant 0 : i32
    %c0_i32_1 = arith.constant 0 : i32
    return %arg0, %c0_i32, %c0_i32_0 : i32, i32, i32
  }
}

</mosaic_0001>

<bundles_post_ra>
// kernel: tpu_custom_call.1
= control target key start
LH: loop header
LB: loop body
LE: loop exit
PB: predicated region body
PF: predicated region fallthrough
CT: control target
= control target key end

     0   :  { %14 = vsyncpa [#allocation4], 0  ;;  %s2149_s0 = inlined_call_operand.vmem [shape: f32[2,16,128], index: 0, kind: input, shape index: {}]   ;;  %s2150_s1 = inlined_call_operand.hbm [shape: f32[2,128,128], index: 1, kind: input, shape index: {}]   ;;  %s2151_s2 = inlined_call_operand.vmem [shape: f32[2,16,1], index: 2, kind: input, shape index: {}]   ;;  %s2152_s3 = inlined_call_operand.vmem [shape: f32[2,1,128], index: 3, kind: input, shape index: {}]   ;;  %s2153_s4 = inlined_call_operand.vmem [shape: f32[1,128], index: 4, kind: input, shape index: {}]   ;;  %s2154_s5 = inlined_call_operand.vmem [shape: f32[1,128], index: 5, kind: input, shape index: {}]   ;;  %s2155_s6 = inlined_call_operand.vmem [shape: f32[1,128], index: 6, kind: input, shape index: {}]   ;;  %s2156_s7 = inlined_call_operand.<no memory space> [shape: f32[1], index: 7, kind: input, shape index: {}]   ;;  %s2157_s8 = inlined_call_operand.hbm [shape: f32[2,16,512], index: 8, kind: output, shape index: {}]  }
   0x1   :  { %15 = vsyncpa [#allocation5], 0  ;;  %s1735_s27 = smov [#allocation3]  }
   0x2   :  { %s23_s28 = sshll.u32 %s1735_s27, 4  ;;  %s24_s28 = int_to_ptr.vmem [resolvable:$true] %s23_s28 }
   0x3   :  { %s1699_s29 = scalar_lea.vmem %s24_s28, 4096  ;;  %p1704_p1 = scmp.lt.s32.totalorder %s24_s28, %s24_s28 }
   0x4   :  { %p1700_p0 = scmp.ne.s32.totalorder %s24_s28, %s1699_s29  ;;  %p1705_p2 = scmp.lt.s32.totalorder %s1699_s29, %s1699_s29 }
   0x6   :  { %p1706_p3 = por %p1705_p2, %p1704_p1 }
   0x8   :  { %p1707_p4 = pnand %p1706_p3, %p1700_p0 }
   0xa   :  { %1710 = shalt.err (!%p1707_p4)
}
   0xb   :  { %s1736_s30 = smov 128   ;;  %s1737_s9 = smov 8  }
   0xc   :  { %29 = dma.hbm_to_vmem [thread:$0]  %s2150_s1, 4096, %s24_s28, [#allocation4], %s1736_s30, %s1736_s30, %s1737_s9  }
   0xd   :  { %1731 = dma.done.wait [#allocation4], 4096  }
   0xe   :  { %1732 = vsyncadd [#allocation4], 4294963200  ;;  %v1790_v0 = vld [vmem:[#allocation3 + $0x78] sm:$0xff]  ;;  %v1794_v2 = vld [vmem:[#allocation3 + $0x70] sm:$0xff]  ;;  %v1738_v51 = vmov 0   ;;  %v288_v52 = vlaneseq  ;;  %vm594_vm12 = vcmask 130048  }
   0xf   :  { %v1792_v1 = vld [vmem:[#allocation3 + $0xf8] sm:$0xff]  ;;  %1383 = vmatprep.subr.mxu0 %v1790_v0  ;;  %v1798_v3 = vld [vmem:[#allocation3 + $0xf0] sm:$0xff]  ;;  %v1804_v4 = vld [vmem:[#allocation3 + $0x68] sm:$0xff]  ;;  %1658 = vset.pattern.permute.xlu1 %v1738_v51 }
  0x10   :  { %1418 = vmatprep.subr.mxu1 %v1792_v1  ;;  %1384 = vmatpush3.xpose.msra.mxu0 %v1790_v0  ;;  %v1806_v5 = vld [vmem:[#allocation3 + $0xe8] sm:$0xff]  ;;  %v1812_v6 = vld [vmem:[#allocation3 + $0x60] sm:$0xff]  ;;  %v1818_v8 = vld [vmem:[#allocation3 + $0x58] sm:$0xff]  ;;  %v289_v55 = vshrl.u32 %v288_v52, 7 }
  0x11   :  { %1419 = vmatpush3.xpose.msra.mxu1 %v1792_v1  ;;  %1385 = vmatprep.subr.mxu0 %v1794_v2  ;;  %v1814_v7 = vld [vmem:[#allocation3 + $0xe0] sm:$0xff]  ;;  %v1820_v9 = vld [vmem:[#allocation3 + $0xd8] sm:$0xff]  ;;  %v1843_v13 = vld [vmem:[%s2149_s0 + $0x10] sm:$0xff] }
  0x12   :  { %1420 = vmatprep.subr.mxu1 %v1798_v3  ;;  %v1825_v10 = vld [vmem:[%s2149_s0] sm:$0xff]  ;;  %1165 = vst [vmem:[#allocation6 + $0x40] sm:$0xff] %v1843_v13  ;;  %v1853_v16 = vld [vmem:[%s2149_s0 + $0x8] sm:$0xff]  ;;  %v1858_v17 = vld [vmem:[%s2149_s0 + $0x18] sm:$0xff]  ;;  %1657 = vset.pattern.permute.xlu0 %v1738_v51  ;;  %v290_v57 = vsub.s32 0, %v289_v55 }
  0x13   :  { %v1832_v11 = vld [vmem:[%s2154_s5] ss:$0 sm:$0xff]  ;;  %1163 = vst [vmem:[#allocation6] sm:$0xff] %v1825_v10  ;;  %1164 = vst [vmem:[#allocation6 + $0x20] sm:$0xff] %v1853_v16  ;;  %v1873_v23 = vld [vmem:[#allocation3 + $0x50] sm:$0xff] }
  0x14   :  { %1386 = vmatpush3.xpose.msra.mxu0 %v1794_v2  ;;  %v1837_v12 = vld [vmem:[%s2155_s6] ss:$0 sm:$0xff]  ;;  %1166 = vst [vmem:[#allocation6 + $0x60] sm:$0xff] %v1858_v17  ;;  %v1875_v24 = vld [vmem:[#allocation3 + $0xd0] sm:$0xff]  ;;  %v1883_v27 = vld [vmem:[#allocation3 + $0x48] sm:$0xff] }
  0x15   :  { %1421 = vmatpush3.xpose.msra.mxu1 %v1798_v3  ;;  %1387 = vmatprep.subr.mxu0 %v1804_v4  ;;  %v115_v14 = vmul.f32 %v1837_v12, %v1825_v10  ;;  %v117_v15 = vmul.f32 %v1837_v12, %v1843_v13  ;;  %v1204_v18 = vld [vmem:[%s2153_s4] ss:$0 sm:$0xff]  ;;  %v1885_v28 = vld [vmem:[#allocation3 + $0xc8] sm:$0xff]  ;;  %v1899_v31 = vld [vmem:[#allocation3 + $0x38] sm:$0xff]  ;;  %v116_v47 = vmul.f32 %v1837_v12, %v1853_v16 }
  0x16   :  { %1422 = vmatprep.subr.mxu1 %v1806_v5  ;;  %v98_v19 = vmul.f32 %v1204_v18, %v1853_v16  ;;  %v97_v20 = vmul.f32 %v1204_v18, %v1825_v10  ;;  %v100_v25 = vmul.f32 %v1204_v18, %v1858_v17  ;;  %v99_v26 = vmul.f32 %v1204_v18, %v1843_v13  ;;  %v1891_v29 = vld [vmem:[#allocation3 + $0x40] sm:$0xff]  ;;  %v1901_v32 = vld [vmem:[#allocation3 + $0xb8] sm:$0xff]  ;;  %v1907_v33 = vld [vmem:[#allocation3 + $0x30] sm:$0xff] }
  0x17   :  { %v125_v21 = vadd.f32 %v1832_v11, %v115_v14  ;;  %v127_v22 = vadd.f32 %v1832_v11, %v117_v15  ;;  %v1893_v30 = vld [vmem:[#allocation3 + $0xc0] sm:$0xff]  ;;  %v1909_v34 = vld [vmem:[#allocation3 + $0xb0] sm:$0xff]  ;;  %v1915_v35 = vld [vmem:[#allocation3 + $0x28] sm:$0xff]  ;;  %v118_v48 = vmul.f32 %v1837_v12, %v1858_v17  ;;  %v126_v49 = vadd.f32 %v1832_v11, %v116_v47 }
  0x18   :  { %1388 = vmatpush3.xpose.msra.mxu0 %v1804_v4  ;;  %103 = vadd.xlane.f32.xlu1 %v98_v19  ;;  %v1917_v36 = vld [vmem:[#allocation3 + $0xa8] sm:$0xff]  ;;  %v1923_v37 = vld [vmem:[#allocation3 + $0x20] sm:$0xff]  ;;  %v1931_v39 = vld [vmem:[#allocation3 + $0x18] sm:$0xff] }
  0x19   :  { %1423 = vmatpush3.xpose.msra.mxu1 %v1806_v5  ;;  %1389 = vmatprep.subr.mxu0 %v1812_v6  ;;  %v1925_v38 = vld [vmem:[#allocation3 + $0xa0] sm:$0xff]  ;;  %v1933_v40 = vld [vmem:[#allocation3 + $0x98] sm:$0xff]  ;;  %v1939_v41 = vld [vmem:[#allocation3 + $0x10] sm:$0xff]  ;;  %v128_v50 = vadd.f32 %v1832_v11, %v118_v48 }
  0x1a   :  { %1424 = vmatprep.subr.mxu1 %v1814_v7  ;;  %1415 = vmatprep.mubr.f32.mxu0 %v125_v21  ;;  %v1941_v42 = vld [vmem:[#allocation3 + $0x90] sm:$0xff]  ;;  %v1947_v43 = vld [vmem:[#allocation3 + $0x8] sm:$0xff]  ;;  %v1955_v45 = vld [vmem:[#allocation3] sm:$0xff] }
  0x1b   :  { %1450 = vmatprep.mubr.f32.mxu1 %v127_v22  ;;  %101 = vadd.xlane.f32.xlu0 %v97_v20  ;;  %v1949_v44 = vld [vmem:[#allocation3 + $0x88] sm:$0xff]  ;;  %v1957_v46 = vld [vmem:[#allocation3 + $0x80] sm:$0xff]  ;;  %v83_v18 = vld [vmem:[%s2151_s2 + $0x10] sm:$0xff] }
  0x1c   :  { %1390 = vmatpush3.xpose.msra.mxu0 %v1812_v6  ;;  %107 = vadd.xlane.f32.xlu1 %v100_v25  ;;  %v86_v53 = vld [vmem:[%s2152_s3 + $0x1] sm:$0x1]  ;;  %v85_v54 = vld [vmem:[%s2152_s3] sm:$0x1]  ;;  %v82_v15 = vld [vmem:[%s2151_s2 + $0x8] sm:$0xff]  ;;  %vm340_vm5 = vcmp.gt.f32.partialorder %v83_v18, 0.0 }
  0x1d   :  { %1425 = vmatpush3.xpose.msra.mxu1 %v1814_v7  ;;  %1391 = vmatprep.subr.mxu0 %v1818_v8  ;;  %vm285_vm0 = vcmp.gt.f32.partialorder %v86_v53, 0.0  ;;  %vm284_vm1 = vcmp.gt.f32.partialorder %v85_v54, 0.0  ;;  %vm339_vm4 = vcmp.gt.f32.partialorder %v82_v15, 0.0  ;;  %v81_v20 = vld [vmem:[%s2151_s2] sm:$0xff]  ;;  %v344_v21 = vsel %vm340_vm5, 1, %v1738_v51 }
  0x1e   :  { %1426 = vmatprep.subr.mxu1 %v1820_v9  ;;  %v287_v58 = vsel %vm285_vm0, 1, %v1738_v51  ;;  %v286_v59 = vsel %vm284_vm1, 1, %v1738_v51  ;;  %v343_v19 = vsel %vm339_vm4, 1, %v1738_v51  ;;  %vm338_vm6 = vcmp.gt.f32.partialorder %v81_v20, 0.0 }
  0x1f   :  { %105 = vadd.xlane.f32.xlu0 %v99_v26  ;;  %v295_v61 = vrot.slane %v287_v58, %v290_v57  ;;  %v291_v62 = vrot.slane %v286_v59, %v290_v57  ;;  %v342_v22 = vsel %vm338_vm6, 1, %v1738_v51 }
  0x20   :  { %1392 = vmatpush3.xpose.msra.mxu0 %v1818_v8 }
  0x21   :  { %1427 = vmatpush3.xpose.msra.mxu1 %v1820_v9  ;;  %1393 = vmatprep.subr.mxu0 %v1873_v23  ;;  %vm297_vm2 = vcmp.eq.s32.totalorder %v295_v61, 1  ;;  %vm296_vm3 = vcmp.eq.s32.totalorder %v291_v62, 1 }
  0x22   :  { %1428 = vmatprep.subr.mxu1 %v1875_v24 }
  0x24   :  { %1394 = vmatpush3.xpose.msra.mxu0 %v1873_v23 }
  0x25   :  { %1429 = vmatpush3.xpose.msra.mxu1 %v1875_v24  ;;  %1395 = vmatprep.subr.mxu0 %v1883_v27 }
  0x26   :  { %1430 = vmatprep.subr.mxu1 %v1885_v28 }
  0x28   :  { %1396 = vmatpush3.xpose.msra.mxu0 %v1883_v27 }
  0x29   :  { %1431 = vmatpush3.xpose.msra.mxu1 %v1885_v28  ;;  %1397 = vmatprep.subr.mxu0 %v1891_v29 }
  0x2a   :  { %1432 = vmatprep.subr.mxu1 %v1893_v30 }
  0x2c   :  { %1398 = vmatpush3.xpose.msra.mxu0 %v1891_v29 }
  0x2d   :  { %1433 = vmatpush3.xpose.msra.mxu1 %v1893_v30  ;;  %1399 = vmatprep.subr.mxu0 %v1899_v31 }
  0x2e   :  { %1434 = vmatprep.subr.mxu1 %v1901_v32 }
  0x30   :  { %1400 = vmatpush3.xpose.msra.mxu0 %v1899_v31 }
  0x31   :  { %1435 = vmatpush3.xpose.msra.mxu1 %v1901_v32  ;;  %1401 = vmatprep.subr.mxu0 %v1907_v33 }
  0x32   :  { %1436 = vmatprep.subr.mxu1 %v1909_v34 }
  0x34   :  { %1402 = vmatpush3.xpose.msra.mxu0 %v1907_v33 }
  0x35   :  { %1437 = vmatpush3.xpose.msra.mxu1 %v1909_v34  ;;  %1403 = vmatprep.subr.mxu0 %v1915_v35 }
  0x36   :  { %1438 = vmatprep.subr.mxu1 %v1917_v36 }
  0x38   :  { %1404 = vmatpush3.xpose.msra.mxu0 %v1915_v35 }
  0x39   :  { %1439 = vmatpush3.xpose.msra.mxu1 %v1917_v36  ;;  %1405 = vmatprep.subr.mxu0 %v1923_v37 }
  0x3a   :  { %1440 = vmatprep.subr.mxu1 %v1925_v38 }
  0x3c   :  { %1406 = vmatpush3.xpose.msra.mxu0 %v1923_v37 }
  0x3d   :  { %1441 = vmatpush3.xpose.msra.mxu1 %v1925_v38  ;;  %1407 = vmatprep.subr.mxu0 %v1931_v39 }
  0x3e   :  { %1442 = vmatprep.subr.mxu1 %v1933_v40 }
  0x40   :  { %1408 = vmatpush3.xpose.msra.mxu0 %v1931_v39 }
  0x41   :  { %1443 = vmatpush3.xpose.msra.mxu1 %v1933_v40  ;;  %1409 = vmatprep.subr.mxu0 %v1939_v41 }
  0x42   :  { %1444 = vmatprep.subr.mxu1 %v1941_v42 }
  0x44   :  { %1410 = vmatpush3.xpose.msra.mxu0 %v1939_v41 }
  0x45   :  { %1445 = vmatpush3.xpose.msra.mxu1 %v1941_v42  ;;  %1411 = vmatprep.subr.mxu0 %v1947_v43 }
  0x46   :  { %1446 = vmatprep.subr.mxu1 %v1949_v44 }
  0x48   :  { %1412 = vmatpush3.xpose.msra.mxu0 %v1947_v43 }
  0x49   :  { %1447 = vmatpush3.xpose.msra.mxu1 %v1949_v44  ;;  %1413 = vmatprep.subr.mxu0 %v1955_v45 }
  0x4a   :  { %1448 = vmatprep.subr.mxu1 %v1957_v46 }
  0x4c   :  { %1414 = vmatpush3.xpose.msra.mxu0 %v1955_v45 }
  0x4d   :  { %1449 = vmatpush3.xpose.msra.mxu1 %v1957_v46  ;;  %1453 = vmatprep.subr.mxu0 %v1790_v0 }
  0x4e   :  { %1488 = vmatprep.subr.mxu1 %v1792_v1 }
  0x4f   :  { %1416 = vmatmul.mubr.f32.vlgmr.msra.gmra.mxu0 %v126_v49 }
  0x50   :  { %1451 = vmatmul.mubr.f32.vlgmr.msra.gmra.mxu1 %v128_v50  ;;  %1454 = vmatpush3.msra.mxu0 %v1790_v0 }
  0x51   :  { %1489 = vmatpush3.msra.mxu1 %v1792_v1  ;;  %1455 = vmatprep.subr.mxu0 %v1794_v2  ;;  %v279_v1 = vstv %s2156_s7 }
  0x52   :  { %1490 = vmatprep.subr.mxu1 %v1798_v3  ;;  %1456 = vmatpush3.msra.mxu0 %v1794_v2 }
  0x53   :  { %1491 = vmatpush3.msra.mxu1 %v1798_v3  ;;  %1457 = vmatprep.subr.mxu0 %v1804_v4 }
  0x54   :  { %1492 = vmatprep.subr.mxu1 %v1806_v5  ;;  %1458 = vmatpush3.msra.mxu0 %v1804_v4 }
  0x55   :  { %1493 = vmatpush3.msra.mxu1 %v1806_v5  ;;  %1459 = vmatprep.subr.mxu0 %v1812_v6 }
  0x56   :  { %1494 = vmatprep.subr.mxu1 %v1814_v7  ;;  %1460 = vmatpush3.msra.mxu0 %v1812_v6 }
  0x57   :  { %1495 = vmatpush3.msra.mxu1 %v1814_v7  ;;  %1461 = vmatprep.subr.mxu0 %v1818_v8 }
  0x58   :  { %1496 = vmatprep.subr.mxu1 %v1820_v9  ;;  %1462 = vmatpush3.msra.mxu0 %v1818_v8 }
  0x59   :  { %1497 = vmatpush3.msra.mxu1 %v1820_v9  ;;  %1463 = vmatprep.subr.mxu0 %v1873_v23 }
  0x5a   :  { %1498 = vmatprep.subr.mxu1 %v1875_v24  ;;  %1464 = vmatpush3.msra.mxu0 %v1873_v23 }
  0x5b   :  { %1499 = vmatpush3.msra.mxu1 %v1875_v24  ;;  %1465 = vmatprep.subr.mxu0 %v1883_v27 }
  0x5c   :  { %1500 = vmatprep.subr.mxu1 %v1885_v28  ;;  %1466 = vmatpush3.msra.mxu0 %v1883_v27 }
  0x5d   :  { %1501 = vmatpush3.msra.mxu1 %v1885_v28  ;;  %1467 = vmatprep.subr.mxu0 %v1891_v29  ;;  %v84_v28 = vld [vmem:[%s2151_s2 + $0x18] sm:$0xff]  ;;  %s1739_s2 = smov [#allocation6]  }
  0x5e   :  { %1502 = vmatprep.subr.mxu1 %v1893_v30  ;;  %1468 = vmatpush3.msra.mxu0 %v1891_v29  ;;  %vm341_vm7 = vcmp.gt.f32.partialorder %v84_v28, 0.0  ;;  %s1192_s11 = sshll.u32 %s1739_s2, 4  ;;  %s1193_s11 = int_to_ptr.vmem [resolvable:$true] %s1192_s11 }
  0x5f   :  { %1503 = vmatpush3.msra.mxu1 %v1893_v30  ;;  %1469 = vmatprep.subr.mxu0 %v1899_v31  ;;  %v345_v29 = vsel %vm341_vm7, 1, %v1738_v51  ;;  %s1711_s1 = scalar_lea.vmem %s1193_s11, 2048  ;;  %p1716_p6 = scmp.lt.s32.totalorder %s1193_s11, %s1193_s11 }
  0x60   :  { %1504 = vmatprep.subr.mxu1 %v1901_v32  ;;  %1470 = vmatpush3.msra.mxu0 %v1899_v31  ;;  %p1712_p5 = scmp.ne.s32.totalorder %s1193_s11, %s1711_s1  ;;  %p1717_p7 = scmp.lt.s32.totalorder %s1711_s1, %s1711_s1 }
  0x61   :  { %1505 = vmatpush3.msra.mxu1 %v1901_v32  ;;  %1471 = vmatprep.subr.mxu0 %v1907_v33 }
  0x62   :  { %1506 = vmatprep.subr.mxu1 %v1909_v34  ;;  %1472 = vmatpush3.msra.mxu0 %v1907_v33  ;;  %p1718_p8 = por %p1717_p7, %p1716_p6 }
  0x63   :  { %1507 = vmatpush3.msra.mxu1 %v1909_v34  ;;  %1473 = vmatprep.subr.mxu0 %v1915_v35 }
  0x64   :  { %1508 = vmatprep.subr.mxu1 %v1917_v36  ;;  %1474 = vmatpush3.msra.mxu0 %v1915_v35  ;;  %p1719_p9 = pnand %p1718_p8, %p1712_p5 }
  0x65   :  { %1509 = vmatpush3.msra.mxu1 %v1917_v36  ;;  %1475 = vmatprep.subr.mxu0 %v1923_v37 }
  0x66   :  { %1510 = vmatprep.subr.mxu1 %v1925_v38  ;;  %1476 = vmatpush3.msra.mxu0 %v1923_v37 }
  0x67   :  { %1511 = vmatpush3.msra.mxu1 %v1925_v38  ;;  %1477 = vmatprep.subr.mxu0 %v1931_v39 }
  0x68   :  { %1512 = vmatprep.subr.mxu1 %v1933_v40  ;;  %1478 = vmatpush3.msra.mxu0 %v1931_v39 }
  0x69   :  { %1513 = vmatpush3.msra.mxu1 %v1933_v40  ;;  %1479 = vmatprep.subr.mxu0 %v1939_v41 }
  0x6a   :  { %1514 = vmatprep.subr.mxu1 %v1941_v42  ;;  %1480 = vmatpush3.msra.mxu0 %v1939_v41 }
  0x6b   :  { %1515 = vmatpush3.msra.mxu1 %v1941_v42  ;;  %1481 = vmatprep.subr.mxu0 %v1947_v43 }
  0x6c   :  { %1516 = vmatprep.subr.mxu1 %v1949_v44  ;;  %1482 = vmatpush3.msra.mxu0 %v1947_v43 }
  0x6d   :  { %1517 = vmatpush3.msra.mxu1 %v1949_v44  ;;  %1483 = vmatprep.subr.mxu0 %v1955_v45 }
  0x6e   :  { %1518 = vmatprep.subr.mxu1 %v1957_v46  ;;  %1484 = vmatpush3.msra.mxu0 %v1955_v45 }
  0x6f   :  { %1519 = vmatpush3.msra.mxu1 %v1957_v46  ;;  %1523 = vmatprep.subr.mxu0 %v1853_v16 }
  0x70   :  { %1551 = vmatprep.subr.mxu1 %v1858_v17 }
  0xa1   :  { %v104_v56 = vpop.xlane.xlu1 %103 }
  0xa4   :  { %v102_v4 = vpop.xlane.xlu0 %101 }
  0xa5   :  { %v108_v60 = vpop.xlane.xlu1 %107 }
  0xa8   :  { %v106_v24 = vpop.xlane.xlu0 %105 }
 0x10f   :  { %v1417_v0 = vpop.f32.mrf.mxu0 }
 0x110   :  { %v1452_v63 = vpop.f32.mrf.mxu1  ;;  %v201_v3 = vadd.f32 %v1417_v0, %v104_v56 }
 0x111   :  { %v276_v2 = vadd.f32 %v1452_v63, %v108_v60  ;;  %v195_v5 = vpop.f32.mrf.mxu0 }
 0x112   :  { %v196_v6 = vadd.f32 %v195_v5, %v102_v4  ;;  %v281_v8 = vadd.f32 %v279_v1, %v201_v3  ;;  %v270_v23 = vpop.f32.mrf.mxu1 }
 0x113   :  { %v2046_v7 = vadd.f32 %v279_v1, %v276_v2  ;;  %v271_v25 = vadd.f32 %v270_v23, %v106_v24 }
 0x114   :  { %v299_v11 = vsel %vm296_vm3, %v281_v8, -1e+30  ;;  %v280_v12 = vadd.f32 %v279_v1, %v196_v6 }
 0x115   :  { %v301_v9 = vsel %vm297_vm2, %v2046_v7, -1e+30  ;;  %304 = vmax.xlane.f32.xlu0 %v299_v11  ;;  %v282_v26 = vadd.f32 %v279_v1, %v271_v25 }
 0x116   :  { %308 = vmax.xlane.f32.xlu1 %v301_v9  ;;  %v298_v14 = vsel %vm296_vm3, %v280_v12, -1e+30 }
 0x117   :  { %v300_v27 = vsel %vm297_vm2, %v282_v26, -1e+30 }
 0x119   :  { %302 = vmax.xlane.f32.xlu0 %v298_v14 }
 0x127   :  { %350 = vperm.xlu1 %1658, %v343_v19  }
 0x12b   :  { %353 = vperm.xlu1 %1658, %v344_v21  }
 0x12f   :  { %347 = vperm.xlu0 %1657, %v342_v22  }
 0x14f   :  { %306 = vmax.xlane.f32.xlu1 %v300_v27 }
 0x160   :  { %356 = vperm.xlu1 %1658, %v345_v29  }
 0x19e   :  { %v305_v30 = vpop.xlane.xlu0 %304 }
 0x19f   :  { %v309_v31 = vpop.xlane.xlu1 %308  ;;  %v311_v33 = vsub.f32 %v299_v11, %v305_v30 }
 0x1a0   :  { %v313_v37 = vsub.f32 %v301_v9, %v309_v31 }
 0x1a1   :  { %v316_v38 = vmul.f32 1.442695, %v311_v33 }
 0x1a2   :  { %v303_v32 = vpop.xlane.xlu0 %302  ;;  %v320_v40 = vmul.f32 1.442695, %v313_v37 }
 0x1a3   :  { %v310_v34 = vsub.f32 %v298_v14, %v303_v32  ;;  %v351_v36 = vpop.permute.xlu1 %350 }
 0x1a4   :  { %vm359_vm8 = vcmp.eq.s32.totalorder %v351_v36, 1 }
 0x1a5   :  { %v314_v35 = vmul.f32 1.442695, %v310_v34  ;;  %v363_v41 = vsel %vm359_vm8, %v281_v8, -1e+30 }
 0x1a7   :  { %1659 = vpow2.f32 %v314_v35  ;;  %v354_v62 = vpop.permute.xlu1 %353 }
 0x1a8   :  { %1661 = vpow2.f32 %v316_v38  ;;  %vm360_vm10 = vcmp.eq.s32.totalorder %v354_v62, 1 }
 0x1a9   :  { %1663 = vpow2.f32 %v320_v40  ;;  %v364_v8 = vsel %vm360_vm10, %v282_v26, -1e+30 }
 0x1aa   :  { %v348_v39 = vpop.permute.xlu0 %347 }
 0x1ab   :  { %vm358_vm9 = vcmp.eq.s32.totalorder %v348_v39, 1 }
 0x1ac   :  { %v362_v42 = vsel %vm358_vm9, %v280_v12, -1e+30 }
 0x1ad   :  { %v366_v43 = vmax.f32 %v362_v42, %v363_v41 }
 0x1af   :  { %v367_v44 = vrot.slane %v366_v43, 4 }
 0x1b1   :  { %v368_v45 = vmax.f32 %v366_v43, %v367_v44 }
 0x1b3   :  { %v369_v46 = vrot.slane %v368_v45, 2 }
 0x1b4   :  { %v2063_v47 = vpop.eup %1659 }
 0x1b5   :  { %v370_v48 = vmax.f32 %v368_v45, %v369_v46  ;;  %322 = vadd.xlane.f32.xlu1 %v2063_v47  ;;  %v2066_v50 = vpop.eup %1661 }
 0x1b6   :  { %v2069_v54 = vpop.eup %1663 }
 0x1b7   :  { %v371_v49 = vrot.slane %v370_v48, 1 }
 0x1b9   :  { %v372_v51 = vmax.f32 %v370_v48, %v371_v49  ;;  %324 = vadd.xlane.f32.xlu1 %v2066_v50 }
 0x1bb   :  { %v380_v52 = vsub.f32 %v362_v42, %v372_v51  ;;  %v381_v53 = vsub.f32 %v363_v41, %v372_v51 }
 0x1bd   :  { %v384_v55 = vmul.f32 1.442695, %v380_v52  ;;  %v386_v56 = vmul.f32 1.442695, %v381_v53  ;;  %328 = vadd.xlane.f32.xlu1 %v2069_v54 }
 0x1bf   :  { %1665 = vpow2.f32 %v384_v55 }
 0x1c0   :  { %1667 = vpow2.f32 %v386_v56 }
 0x1cc   :  { %v1666_v57 = vpop.eup %1665 }
 0x1cd   :  { %v1668_v58 = vpop.eup %1667 }
 0x1ce   :  { %v392_v59 = vadd.f32 %v1668_v58, %v1666_v57 }
 0x1d0   :  { %v393_v60 = vrot.slane %v392_v59, 4 }
 0x1d2   :  { %v394_v61 = vadd.f32 %v393_v60, %v392_v59 }
 0x1d4   :  { %v395_v63 = vrot.slane %v394_v61, 2 }
 0x1d6   :  { %v396_v0 = vadd.f32 %v395_v63, %v394_v61 }
 0x1d8   :  { %v307_v1 = vpop.xlane.xlu1 %306  ;;  %v397_v3 = vrot.slane %v396_v0, 1 }
 0x1d9   :  { %v312_v2 = vsub.f32 %v300_v27, %v307_v1 }
 0x1da   :  { %v398_v5 = vadd.f32 %v397_v3, %v396_v0 }
 0x1db   :  { %v318_v4 = vmul.f32 1.442695, %v312_v2 }
 0x1dc   :  { %v357_v6 = vpop.permute.xlu1 %356 }
 0x1dd   :  { %1669 = vpow2.f32 %v318_v4  ;;  %vm361_vm11 = vcmp.eq.s32.totalorder %v357_v6, 1 }
 0x1de   :  { %v365_v9 = vsel %vm361_vm11, %v2046_v7, -1e+30  ;;  %1671 = vrcp.f32 %v398_v5 }
 0x1df   :  { %v373_v11 = vmax.f32 %v364_v8, %v365_v9 }
 0x1e1   :  { %v374_v12 = vrot.slane %v373_v11, 4 }
 0x1e3   :  { %v375_v14 = vmax.f32 %v373_v11, %v374_v12 }
 0x1e5   :  { %v376_v15 = vrot.slane %v375_v14, 2 }
 0x1e7   :  { %v377_v18 = vmax.f32 %v375_v14, %v376_v15 }
 0x1e9   :  { %v378_v19 = vrot.slane %v377_v18, 1 }
 0x1ea   :  { %v1670_v20 = vpop.eup %1669 }
 0x1eb   :  { %v379_v21 = vmax.f32 %v377_v18, %v378_v19  ;;  %326 = vadd.xlane.f32.xlu0 %v1670_v20  ;;  %v1672_v22 = vpop.eup %1671 }
 0x1ec   :  { %v408_v28 = vmul.f32 %v1672_v22, %v1666_v57  ;;  %v409_v7 = vmul.f32 %v1672_v22, %v1668_v58 }
 0x1ed   :  { %v382_v23 = vsub.f32 %v364_v8, %v379_v21  ;;  %v383_v24 = vsub.f32 %v365_v9, %v379_v21 }
 0x1ef   :  { %v388_v25 = vmul.f32 1.442695, %v382_v23  ;;  %v390_v27 = vmul.f32 1.442695, %v383_v24 }
 0x1f0   :  { %562 = vxpose.xlu1.b32.start [1/2] (short) %v408_v28, 128 }
 0x1f1   :  { %1673 = vpow2.f32 %v388_v25 }
 0x1f2   :  { %1675 = vpow2.f32 %v390_v27 }
 0x1f4   :  { %563 = vxpose.xlu1.b32.end [2/2] (short) %v409_v7, 128 }
 0x1fe   :  { %v1674_v26 = vpop.eup %1673 }
 0x1ff   :  { %v1676_v29 = vpop.eup %1675 }
 0x200   :  { %v399_v30 = vadd.f32 %v1676_v29, %v1674_v26 }
 0x202   :  { %v400_v31 = vrot.slane %v399_v30, 4 }
 0x204   :  { %v401_v32 = vadd.f32 %v400_v31, %v399_v30 }
 0x206   :  { %v402_v33 = vrot.slane %v401_v32, 2 }
 0x208   :  { %v403_v34 = vadd.f32 %v402_v33, %v401_v32 }
 0x20a   :  { %v404_v35 = vrot.slane %v403_v34, 1 }
 0x20c   :  { %v405_v36 = vadd.f32 %v404_v35, %v403_v34 }
 0x20e   :  { %1677 = vrcp.f32 %v405_v36 }
 0x21b   :  { %v1678_v37 = vpop.eup %1677 }
 0x21c   :  { %v410_v38 = vmul.f32 %v1678_v37, %v1674_v26  ;;  %v411_v39 = vmul.f32 %v1678_v37, %v1676_v29 }
 0x21e   :  { %788 = vxpose.xlu0.b32.start [1/2] (short) %v410_v38, 128 }
 0x222   :  { %789 = vxpose.xlu0.b32.end [2/2] (short) %v411_v39, 128 }
 0x23e   :  { %v323_v40 = vpop.xlane.xlu1 %322 }
 0x23f   :  { %1679 = vrcp.f32 %v323_v40 }
 0x242   :  { %v325_v41 = vpop.xlane.xlu1 %324 }
 0x243   :  { %1681 = vrcp.f32 %v325_v41 }
 0x246   :  { %v329_v46 = vpop.xlane.xlu1 %328 }
 0x247   :  { %1683 = vrcp.f32 %v329_v46 }
 0x24c   :  { %v1680_v42 = vpop.eup %1679 }
 0x24d   :  { %v2074_v43 = vmul.f32 %v1680_v42, %v2063_v47 }
 0x24f   :  { %1485 = vmatprep.mubr.f32.mxu0 %v2074_v43 }
 0x250   :  { %v1682_v44 = vpop.eup %1681 }
 0x251   :  { %v2078_v45 = vmul.f32 %v1682_v44, %v2066_v50 }
 0x253   :  { %1486 = vmatmul.mubr.f32.vlgmr.msra.gmra.mxu0 %v2078_v45 }
 0x254   :  { %1524 = vmatpush3.msra.mxu0 %v1853_v16  ;;  %v1684_v53 = vpop.eup %1683 }
 0x255   :  { %1525 = vmatprep.subr.mxu0 %v1825_v10  ;;  %v2091_v58 = vmul.f32 %v1684_v53, %v2069_v54 }
 0x256   :  { %1526 = vmatpush3.msra.mxu0 %v1825_v10 }
 0x26c   :  { %v578_v48 = vpop.trf.xlu1 }
 0x26d   :  { %1527 = vmatprep.mubr.msk.f32.mxu0 %vm594_vm12, %v578_v48 }
 0x270   :  { %v579_v47 = vpop.trf.xlu1 }
 0x271   :  { %1528 = vmatmul.mubr.msk.f32.vlgmr.msra.gmra.mxu0 %vm594_vm12, %v579_v47 }
 0x274   :  { %v327_v49 = vpop.xlane.xlu0 %326  ;;  %v580_v50 = vpop.trf.xlu1 }
 0x275   :  { %1685 = vrcp.f32 %v327_v49  ;;  %1530 = vmatprep.mubr.msk.f32.mxu0 %vm594_vm12, %v580_v50 }
 0x278   :  { %v581_v51 = vpop.trf.xlu1 }
 0x279   :  { %1531 = vmatmul.mubr.msk.f32.gmra.mxu0 %vm594_vm12, %v581_v51 }
 0x27c   :  { %v582_v52 = vpop.trf.xlu1 }
 0x27d   :  { %1533 = vmatprep.mubr.msk.f32.mxu0 %vm594_vm12, %v582_v52 }
 0x280   :  { %v583_v55 = vpop.trf.xlu1 }
 0x281   :  { %1534 = vmatmul.mubr.msk.f32.gmra.mxu0 %vm594_vm12, %v583_v55 }
 0x282   :  { %v1686_v56 = vpop.eup %1685 }
 0x283   :  { %v336_v57 = vmul.f32 %v1686_v56, %v1670_v20 }
 0x284   :  { %v584_v59 = vpop.trf.xlu1 }
 0x285   :  { %1520 = vmatprep.mubr.f32.mxu1 %v336_v57  ;;  %1536 = vmatprep.mubr.msk.f32.mxu0 %vm594_vm12, %v584_v59 }
 0x286   :  { %1521 = vmatmul.mubr.f32.vlgmr.msra.gmra.mxu1 %v2091_v58 }
 0x287   :  { %1552 = vmatpush3.msra.mxu1 %v1858_v17 }
 0x288   :  { %1553 = vmatprep.subr.mxu1 %v1843_v13  ;;  %v585_v60 = vpop.trf.xlu1 }
 0x289   :  { %1554 = vmatpush3.msra.mxu1 %v1843_v13  ;;  %1537 = vmatmul.mubr.msk.f32.gmra.mxu0 %vm594_vm12, %v585_v60 }
 0x28c   :  { %v586_v61 = vpop.trf.xlu1 }
 0x28d   :  { %1539 = vmatprep.mubr.msk.f32.mxu0 %vm594_vm12, %v586_v61 }
 0x290   :  { %v587_v54 = vpop.trf.xlu1 }
 0x291   :  { %1540 = vmatmul.mubr.msk.f32.gmra.mxu0 %vm594_vm12, %v587_v54 }
 0x294   :  { %v588_v62 = vpop.trf.xlu1 }
 0x295   :  { %1542 = vmatprep.mubr.msk.f32.mxu0 %vm594_vm12, %v588_v62  ;;  %v1687_v62 = vld [vmem:[#allocation6 + $0x20] sm:$0xff] }
 0x298   :  { %v589_v63 = vpop.trf.xlu1 }
 0x299   :  { %1543 = vmatmul.mubr.msk.f32.gmra.mxu0 %vm594_vm12, %v589_v63 }
 0x29a   :  { %v804_v0 = vpop.trf.xlu0 }
 0x29b   :  { %1555 = vmatprep.mubr.msk.f32.mxu1 %vm594_vm12, %v804_v0 }
 0x29c   :  { %v590_v1 = vpop.trf.xlu1 }
 0x29d   :  { %1545 = vmatprep.mubr.msk.f32.mxu0 %vm594_vm12, %v590_v1  ;;  %v1688_v1 = vld [vmem:[#allocation6] sm:$0xff] }
 0x29e   :  { %v805_v2 = vpop.trf.xlu0 }
 0x29f   :  { %1556 = vmatmul.mubr.msk.f32.vlgmr.msra.gmra.mxu1 %vm594_vm12, %v805_v2 }
 0x2a0   :  { %v591_v3 = vpop.trf.xlu1 }
 0x2a1   :  { %1546 = vmatmul.mubr.msk.f32.gmra.mxu0 %vm594_vm12, %v591_v3 }
 0x2a2   :  { %v806_v4 = vpop.trf.xlu0 }
 0x2a3   :  { %1558 = vmatprep.mubr.msk.f32.mxu1 %vm594_vm12, %v806_v4  ;;  %v1689_v4 = vld [vmem:[#allocation6 + $0x60] sm:$0xff] }
 0x2a4   :  { %v592_v5 = vpop.trf.xlu1 }
 0x2a5   :  { %1548 = vmatprep.mubr.msk.f32.mxu0 %vm594_vm12, %v592_v5 }
 0x2a6   :  { %v807_v6 = vpop.trf.xlu0 }
 0x2a7   :  { %1559 = vmatmul.mubr.msk.f32.gmra.mxu1 %vm594_vm12, %v807_v6 }
 0x2a8   :  { %v593_v8 = vpop.trf.xlu1 }
 0x2a9   :  { %1549 = vmatmul.mubr.msk.f32.gmra.mxu0 %vm594_vm12, %v593_v8  ;;  %v1690_v8 = vld [vmem:[#allocation6 + $0x40] sm:$0xff] }
 0x2aa   :  { %v808_v9 = vpop.trf.xlu0  ;;  %1611 = vmatprep.mubr.f32.mxu0 %v2074_v43 }
 0x2ab   :  { %1561 = vmatprep.mubr.msk.f32.mxu1 %vm594_vm12, %v808_v9 }
 0x2ae   :  { %v809_v11 = vpop.trf.xlu0 }
 0x2af   :  { %1562 = vmatmul.mubr.msk.f32.gmra.mxu1 %vm594_vm12, %v809_v11 }
 0x2b2   :  { %v810_v12 = vpop.trf.xlu0 }
 0x2b3   :  { %1564 = vmatprep.mubr.msk.f32.mxu1 %vm594_vm12, %v810_v12 }
 0x2b6   :  { %v811_v14 = vpop.trf.xlu0 }
 0x2b7   :  { %1565 = vmatmul.mubr.msk.f32.gmra.mxu1 %vm594_vm12, %v811_v14 }
 0x2ba   :  { %v812_v15 = vpop.trf.xlu0 }
 0x2bb   :  { %1567 = vmatprep.mubr.msk.f32.mxu1 %vm594_vm12, %v812_v15 }
 0x2be   :  { %v813_v18 = vpop.trf.xlu0 }
 0x2bf   :  { %1568 = vmatmul.mubr.msk.f32.gmra.mxu1 %vm594_vm12, %v813_v18 }
 0x2c2   :  { %v814_v19 = vpop.trf.xlu0 }
 0x2c3   :  { %1570 = vmatprep.mubr.msk.f32.mxu1 %vm594_vm12, %v814_v19 }
 0x2c6   :  { %v815_v20 = vpop.trf.xlu0 }
 0x2c7   :  { %1571 = vmatmul.mubr.msk.f32.gmra.mxu1 %vm594_vm12, %v815_v20 }
 0x2ca   :  { %v816_v21 = vpop.trf.xlu0 }
 0x2cb   :  { %1573 = vmatprep.mubr.msk.f32.mxu1 %vm594_vm12, %v816_v21 }
 0x2ce   :  { %v817_v22 = vpop.trf.xlu0 }
 0x2cf   :  { %1574 = vmatmul.mubr.msk.f32.gmra.mxu1 %vm594_vm12, %v817_v22 }
 0x2d2   :  { %v818_v23 = vpop.trf.xlu0 }
 0x2d3   :  { %1576 = vmatprep.mubr.msk.f32.mxu1 %vm594_vm12, %v818_v23 }
 0x2d6   :  { %v819_v24 = vpop.trf.xlu0 }
 0x2d7   :  { %1577 = vmatmul.mubr.msk.f32.gmra.mxu1 %vm594_vm12, %v819_v24 }
 0x2d8   :  { %1646 = vmatprep.mubr.f32.mxu1 %v336_v57 }
 0x313   :  { %v1487_v25 = vpop.f32.mrf.mxu0 }
 0x314   :  { %1168 = vst [vmem:[#allocation6 + $0x28] sm:$0xff] %v1487_v25  ;;  %v1172_v27 = vmul.f32 %v1487_v25, %v1853_v16 }
 0x315   :  { %v478_v28 = vpop.f32.mrf.mxu0 }
 0x316   :  { %1176 = vst [vmem:[#allocation6 + $0x30] sm:$0xff] %v1172_v27  ;;  %1167 = vst [vmem:[#allocation6 + $0x8] sm:$0xff] %v478_v28  ;;  %v1171_v7 = vmul.f32 %v478_v28, %v1825_v10 }
 0x318   :  { %1175 = vst [vmem:[#allocation6 + $0x10] sm:$0xff] %v1171_v7 }
 0x331   :  { %v1529_v26 = vpop.f32.mrf.mxu0 }
 0x333   :  { %v2126_v29 = vpop.f32.mrf.mxu0 }
 0x339   :  { %v1532_v30 = vpop.f32.mrf.mxu0 }
 0x33b   :  { %v719_v31 = vpop.f32.mrf.mxu0 }
 0x341   :  { %v1535_v32 = vpop.f32.mrf.mxu0 }
 0x343   :  { %v729_v34 = vpop.f32.mrf.mxu0 }
 0x346   :  { %v1522_v33 = vpop.f32.mrf.mxu1 }
 0x347   :  { %1170 = vst [vmem:[#allocation6 + $0x68] sm:$0xff] %v1522_v33  ;;  %v1174_v35 = vmul.f32 %v1522_v33, %v1858_v17 }
 0x348   :  { %v553_v36 = vpop.f32.mrf.mxu1 }
 0x349   :  { %1178 = vst [vmem:[#allocation6 + $0x70] sm:$0xff] %v1174_v35  ;;  %1169 = vst [vmem:[#allocation6 + $0x48] sm:$0xff] %v553_v36  ;;  %v1173_v16 = vmul.f32 %v553_v36, %v1843_v13  ;;  %v1538_v37 = vpop.f32.mrf.mxu0 }
 0x34b   :  { %1177 = vst [vmem:[#allocation6 + $0x50] sm:$0xff] %v1173_v16  ;;  %v739_v10 = vpop.f32.mrf.mxu0 }
 0x351   :  { %v1541_v38 = vpop.f32.mrf.mxu0 }
 0x353   :  { %v749_v39 = vpop.f32.mrf.mxu0 }
 0x359   :  { %v1544_v40 = vpop.f32.mrf.mxu0 }
 0x35b   :  { %v759_v41 = vpop.f32.mrf.mxu0 }
 0x35f   :  { %v2130_v48 = vpop.f32.mrf.mxu1 }
 0x361   :  { %v1547_v42 = vpop.f32.mrf.mxu0  ;;  %v2132_v13 = vpop.f32.mrf.mxu1 }
 0x363   :  { %v769_v43 = vpop.f32.mrf.mxu0 }
 0x367   :  { %v2134_v17 = vpop.f32.mrf.mxu1 }
 0x369   :  { %v1550_v44 = vpop.f32.mrf.mxu0  ;;  %v944_v47 = vpop.f32.mrf.mxu1 }
 0x36a   :  { %1579 = vmatprep.subr.mxu0 %v1550_v44 }
 0x36b   :  { %v779_v46 = vpop.f32.mrf.mxu0  ;;  %1580 = vmatpush3.msra.mxu0 %v1550_v44 }
 0x36c   :  { %1581 = vmatprep.subr.mxu0 %v779_v46 }
 0x36d   :  { %1582 = vmatpush3.msra.mxu0 %v779_v46 }
 0x36e   :  { %1583 = vmatprep.subr.mxu0 %v1547_v42 }
 0x36f   :  { %1584 = vmatpush3.msra.mxu0 %v1547_v42  ;;  %v1563_v49 = vpop.f32.mrf.mxu1 }
 0x370   :  { %1585 = vmatprep.subr.mxu0 %v769_v43 }
 0x371   :  { %1586 = vmatpush3.msra.mxu0 %v769_v43  ;;  %v954_v50 = vpop.f32.mrf.mxu1 }
 0x372   :  { %1587 = vmatprep.subr.mxu0 %v1544_v40 }
 0x373   :  { %1588 = vmatpush3.msra.mxu0 %v1544_v40 }
 0x374   :  { %1589 = vmatprep.subr.mxu0 %v759_v41 }
 0x375   :  { %1590 = vmatpush3.msra.mxu0 %v759_v41 }
 0x376   :  { %1591 = vmatprep.subr.mxu0 %v1541_v38 }
 0x377   :  { %1592 = vmatpush3.msra.mxu0 %v1541_v38  ;;  %v1566_v51 = vpop.f32.mrf.mxu1 }
 0x378   :  { %1593 = vmatprep.subr.mxu0 %v749_v39 }
 0x379   :  { %1594 = vmatpush3.msra.mxu0 %v749_v39  ;;  %v964_v52 = vpop.f32.mrf.mxu1 }
 0x37a   :  { %1595 = vmatprep.subr.mxu0 %v1538_v37 }
 0x37b   :  { %1596 = vmatpush3.msra.mxu0 %v1538_v37 }
 0x37c   :  { %1597 = vmatprep.subr.mxu0 %v739_v10 }
 0x37d   :  { %1598 = vmatpush3.msra.mxu0 %v739_v10 }
 0x37e   :  { %1599 = vmatprep.subr.mxu0 %v1535_v32 }
 0x37f   :  { %1600 = vmatpush3.msra.mxu0 %v1535_v32  ;;  %v1569_v53 = vpop.f32.mrf.mxu1 }
 0x380   :  { %1601 = vmatprep.subr.mxu0 %v729_v34 }
 0x381   :  { %1602 = vmatpush3.msra.mxu0 %v729_v34  ;;  %v974_v55 = vpop.f32.mrf.mxu1 }
 0x382   :  { %1603 = vmatprep.subr.mxu0 %v1532_v30 }
 0x383   :  { %1604 = vmatpush3.msra.mxu0 %v1532_v30 }
 0x384   :  { %1605 = vmatprep.subr.mxu0 %v719_v31 }
 0x385   :  { %1606 = vmatpush3.msra.mxu0 %v719_v31 }
 0x386   :  { %1607 = vmatprep.subr.mxu0 %v1529_v26 }
 0x387   :  { %1608 = vmatpush3.msra.mxu0 %v1529_v26  ;;  %v1572_v56 = vpop.f32.mrf.mxu1 }
 0x388   :  { %1609 = vmatprep.subr.mxu0 %v2126_v29 }
 0x389   :  { %1610 = vmatpush3.msra.mxu0 %v2126_v29  ;;  %v984_v57 = vpop.f32.mrf.mxu1 }
 0x38a   :  { %1612 = vmatmul.mubr.f32.vlgmr.msra.gmra.mxu0 %v2078_v45 }
 0x38f   :  { %v1575_v59 = vpop.f32.mrf.mxu1 }
 0x391   :  { %v994_v60 = vpop.f32.mrf.mxu1 }
 0x397   :  { %v1578_v61 = vpop.f32.mrf.mxu1 }
 0x398   :  { %1614 = vmatprep.subr.mxu1 %v1578_v61 }
 0x399   :  { %v1004_v54 = vpop.f32.mrf.mxu1  ;;  %1615 = vmatpush3.msra.mxu1 %v1578_v61 }
 0x39a   :  { %1616 = vmatprep.subr.mxu1 %v1004_v54 }
 0x39b   :  { %1617 = vmatpush3.msra.mxu1 %v1004_v54 }
 0x39c   :  { %1618 = vmatprep.subr.mxu1 %v1575_v59 }
 0x39d   :  { %1619 = vmatpush3.msra.mxu1 %v1575_v59 }
 0x39e   :  { %1620 = vmatprep.subr.mxu1 %v994_v60 }
 0x39f   :  { %1621 = vmatpush3.msra.mxu1 %v994_v60 }
 0x3a0   :  { %1622 = vmatprep.subr.mxu1 %v1572_v56 }
 0x3a1   :  { %1623 = vmatpush3.msra.mxu1 %v1572_v56 }
 0x3a2   :  { %1624 = vmatprep.subr.mxu1 %v984_v57 }
 0x3a3   :  { %1625 = vmatpush3.msra.mxu1 %v984_v57 }
 0x3a4   :  { %1626 = vmatprep.subr.mxu1 %v1569_v53 }
 0x3a5   :  { %1627 = vmatpush3.msra.mxu1 %v1569_v53 }
 0x3a6   :  { %1628 = vmatprep.subr.mxu1 %v974_v55 }
 0x3a7   :  { %1629 = vmatpush3.msra.mxu1 %v974_v55 }
 0x3a8   :  { %1630 = vmatprep.subr.mxu1 %v1566_v51 }
 0x3a9   :  { %1631 = vmatpush3.msra.mxu1 %v1566_v51 }
 0x3aa   :  { %1632 = vmatprep.subr.mxu1 %v964_v52 }
 0x3ab   :  { %1633 = vmatpush3.msra.mxu1 %v964_v52 }
 0x3ac   :  { %1634 = vmatprep.subr.mxu1 %v1563_v49 }
 0x3ad   :  { %1635 = vmatpush3.msra.mxu1 %v1563_v49 }
 0x3ae   :  { %1636 = vmatprep.subr.mxu1 %v954_v50 }
 0x3af   :  { %1637 = vmatpush3.msra.mxu1 %v954_v50 }
 0x3b0   :  { %1638 = vmatprep.subr.mxu1 %v2134_v17 }
 0x3b1   :  { %1639 = vmatpush3.msra.mxu1 %v2134_v17 }
 0x3b2   :  { %1640 = vmatprep.subr.mxu1 %v944_v47 }
 0x3b3   :  { %1641 = vmatpush3.msra.mxu1 %v944_v47 }
 0x3b4   :  { %1642 = vmatprep.subr.mxu1 %v2130_v48 }
 0x3b5   :  { %1643 = vmatpush3.msra.mxu1 %v2130_v48 }
 0x3b6   :  { %1644 = vmatprep.subr.mxu1 %v2132_v13 }
 0x3b7   :  { %1645 = vmatpush3.msra.mxu1 %v2132_v13 }
 0x3b8   :  { %1647 = vmatmul.mubr.f32.vlgmr.msra.gmra.mxu1 %v2091_v58 }
 0x44a   :  { %v1613_v45 = vpop.f32.mrf.mxu0 }
 0x44b   :  { %v1180_v63 = vmul.f32 %v1687_v62, %v1613_v45 }
 0x44c   :  { %v1079_v0 = vpop.f32.mrf.mxu0 }
 0x44d   :  { %1184 = vst [vmem:[#allocation6 + $0x38] sm:$0xff] %v1180_v63  ;;  %v1179_v2 = vmul.f32 %v1688_v1, %v1079_v0 }
 0x44f   :  { %1183 = vst [vmem:[#allocation6 + $0x18] sm:$0xff] %v1179_v2 }
 0x478   :  { %v1648_v3 = vpop.f32.mrf.mxu1 }
 0x479   :  { %v1182_v5 = vmul.f32 %v1689_v4, %v1648_v3 }
 0x47a   :  { %v1154_v6 = vpop.f32.mrf.mxu1 }
 0x47b   :  { %1186 = vst [vmem:[#allocation6 + $0x78] sm:$0xff] %v1182_v5  ;;  %v1181_v9 = vmul.f32 %v1690_v8, %v1154_v6 }
 0x47d   :  { %1185 = vst [vmem:[#allocation6 + $0x58] sm:$0xff] %v1181_v9 }
 0x47e   :  { %1722 = shalt.err (!%p1719_p9)
}
 0x47f   :  { %s1740_s12 = smov 512   ;;  %s1741_s13 = smov 32  }
 0x480   :  { %1198 = dma.vmem_to_hbm [thread:$0]  %s1193_s11, 2048, %s2157_s8, [#allocation5], %s1740_s12, %s1740_s12, %s1741_s13  }
 0x481   :  { %1733 = dma.done.wait [#allocation5], 2048  }
 0x482   :  { %1734 = vsyncadd [#allocation5], 4294965248 }
 0x483   :  { %1202 = vsyncpa [#allocation4], 1 }
 0x484   :  { %1203 = vsyncpa [#allocation5], 1 }

</bundles_post_ra>
